<compile_context>
chip_gen: v7x
topology: tpu7x:2x2x1
jax: 0.10.0
libtpu: 0.0.40
codegen_flags: <defaults>
</compile_context>

<pallas_src>
import functools

import jax
import jax.numpy as jnp
from jax.experimental import pallas as pl
from jax.experimental.pallas import tpu as pltpu


def _pow_static(t, gamma):
    """t**gamma with small integer gamma lowered to repeated multiplies (no exp/log)."""
    g = float(gamma)
    if g == 0.0:
        return jnp.ones_like(t)
    if g.is_integer() and 1.0 <= g <= 8.0:
        n = int(g)
        acc = t
        for _ in range(n - 1):
            acc = acc * t
        return acc
    return jnp.power(t, g)


def _focal_kernel(logits_ref, labels_ref, sum_ref, cnt_ref, *,
                  num_classes, alpha, gamma, ignore_index,
                  total_rows, tile_rows, mask_tail):
    # logits_ref: (C, TR, 128) f32/bf16   labels_ref: (TR, 128) int32
    # sum_ref / cnt_ref: (1, 128) f32 per-(batch, tile) partials.
    labels = labels_ref[...]

    # Pass 1: per-pixel max over classes (numerically stable log-sum-exp).
    m = logits_ref[0].astype(jnp.float32)
    for cc in range(1, num_classes):
        m = jnp.maximum(m, logits_ref[cc].astype(jnp.float32))

    # Pass 2: sum of exps + one-hot select of the true-class logit and its exp.
    # Re-load each class slab from VMEM (cheap) to keep the live vreg set small.
    s = jnp.zeros_like(m)
    sel = jnp.zeros_like(m)
    exp_sel = jnp.zeros_like(m)
    for cc in range(num_classes):
        x = logits_ref[cc].astype(jnp.float32)
        e = jnp.exp(x - m)
        s = s + e
        hit = labels == cc
        sel = jnp.where(hit, x, sel)
        exp_sel = jnp.where(hit, e, exp_sel)

    # ce = logsumexp - x_label ;  pt = exp(-ce) = exp(x_label - m) / s.
    # s >= 1 always (the max class contributes exp(0) = 1), so no div-by-zero.
    ce = jnp.log(s) - (sel - m)
    pt = exp_sel / s

    valid = labels != ignore_index
    if mask_tail:
        row = (pl.program_id(1) * tile_rows
               + jax.lax.broadcasted_iota(jnp.int32, (tile_rows, 128), 0))
        valid = jnp.logical_and(valid, row < total_rows)

    t = jnp.maximum(1.0 - pt, 0.0)
    focal = alpha * _pow_static(t, gamma) * ce
    # where = select, so NaN/inf from ignored / garbage-tail pixels cannot leak in.
    focal = jnp.where(valid, focal, 0.0)
    count = jnp.where(valid, 1.0, 0.0)

    # Sublane reduce (XLU) to lane-dense (1, 128) partials per (batch, tile).
    sum_ref[...] = jnp.sum(focal, axis=0, keepdims=True)
    cnt_ref[...] = jnp.sum(count, axis=0, keepdims=True)


def multiclass_focal_loss(y_pr, y_gt, *, alpha=1.0, gamma=2.0, ignore_index=5,
                          target_tile_bytes=4 * 1024 * 1024, max_tile_rows=2048):
    """y_pr: (N, C, H, W) float logits (f32 or bf16); y_gt: (N, H, W) integer labels."""
    n, c, h, w = y_pr.shape
    assert y_gt.shape == (n, h, w)
    hw = h * w

    r = pl.cdiv(hw, 128)          # pixel rows of 128 lanes
    hw_pad = r * 128

    if hw_pad != hw:
        # TODO(synk): this pad costs one extra HBM pass over the logits; it is only
        # hit when H*W is not a multiple of 128 (rare for segmentation shapes).
        logits_flat = jnp.pad(y_pr.reshape(n, c, hw),
                              ((0, 0), (0, 0), (0, hw_pad - hw)))
        labels_flat = jnp.pad(y_gt.reshape(n, hw), ((0, 0), (0, hw_pad - hw)),
                              constant_values=ignore_index)
    else:
        logits_flat = y_pr.reshape(n, c, hw)       # free, contiguous reshape
        labels_flat = y_gt.reshape(n, hw)

    logits = logits_flat.reshape(n, c, r, 128)     # (N, C, R, 128), class-leading
    labels = labels_flat.reshape(n, r, 128)
    if labels.dtype != jnp.int32:
        labels = labels.astype(jnp.int32)

    # Tile sizing: ~target_tile_bytes of logits+labels per grid step amortizes the
    # per-step pipeline overhead; cap rows to bound in-kernel slab intermediates.
    bytes_per_row = 128 * (c * logits.dtype.itemsize + labels.dtype.itemsize)
    max_rows = max(8, min(max_tile_rows,
                          (target_tile_bytes // bytes_per_row) // 8 * 8))
    tile_rows = r if r <= max_rows else max_rows   # full-extent block always legal
    num_tiles = pl.cdiv(r, tile_rows)
    mask_tail = (num_tiles * tile_rows) != r

    kernel = functools.partial(
        _focal_kernel, num_classes=c, alpha=float(alpha), gamma=float(gamma),
        ignore_index=int(ignore_index), total_rows=r, tile_rows=tile_rows,
        mask_tail=mask_tail)

    # TODO(synk): labels outside [0, C) that are not ignore_index fall through the
    # one-hot select (sel = 0 -> ce = logsumexp) instead of torch's gather UB.
    sum_part, cnt_part = pl.pallas_call(
        kernel,
        out_shape=(jax.ShapeDtypeStruct((n, num_tiles, 1, 128), jnp.float32),
                   jax.ShapeDtypeStruct((n, num_tiles, 1, 128), jnp.float32)),
        grid_spec=pltpu.PrefetchScalarGridSpec(
            num_scalar_prefetch=0,
            grid=(n, num_tiles),
            in_specs=[
                pl.BlockSpec((None, c, tile_rows, 128), lambda b, t: (b, 0, t, 0)),
                pl.BlockSpec((None, tile_rows, 128), lambda b, t: (b, t, 0)),
            ],
            out_specs=[
                pl.BlockSpec((None, None, 1, 128), lambda b, t: (b, t, 0, 0)),
                pl.BlockSpec((None, None, 1, 128), lambda b, t: (b, t, 0, 0)),
            ],
        ),
        compiler_params=pltpu.CompilerParams(
            dimension_semantics=("parallel", "parallel"),
            vmem_limit_bytes=48 * 1024 * 1024),
    )(logits, labels)

    total = jnp.sum(sum_part)
    cnt = jnp.sum(cnt_part)
    return jnp.where(cnt > 0, total / jnp.maximum(cnt, 1.0), jnp.float32(0.0))


def _reference(y_pr, y_gt, alpha=1.0, gamma=2.0, ignore_index=5):
    """Pure-JAX reference mirroring the PyTorch forward."""
    n, c, h, w = y_pr.shape
    logits = jnp.transpose(y_pr, (0, 2, 3, 1)).reshape(-1, c).astype(jnp.float32)
    labels = y_gt.reshape(-1).astype(jnp.int32)
    logp = jax.nn.log_softmax(logits, axis=-1)
    safe_labels = jnp.where(labels == ignore_index, 0, labels)
    ce = -jnp.take_along_axis(logp, safe_labels[:, None], axis=-1)[:, 0]
    valid = labels != ignore_index
    ce = jnp.where(valid, ce, 0.0)
    pt = jnp.exp(-ce)
    focal = alpha * (1.0 - pt) ** gamma * ce
    cnt = jnp.sum(valid)
    return jnp.where(cnt > 0, jnp.sum(jnp.where(valid, focal, 0.0)) / cnt, 0.0)


if __name__ == "__main__":
    key = jax.random.PRNGKey(0)
    k1, k2 = jax.random.split(key)

    N, C, H, W = 2, 4, 16, 16
    ignore_index = 5

    y_pr = jax.random.normal(k1, (N, C, H, W), dtype=jnp.float32)
    # Labels in [0, 4): valid class ids w.r.t. C=4; sprinkle in ignore_index pixels.
    y_gt = jax.random.randint(k2, (N, H, W), 0, 4, dtype=jnp.int32)
    mask = jax.random.bernoulli(jax.random.PRNGKey(7), 0.2, (N, H, W))
    y_gt = jnp.where(mask, ignore_index, y_gt)

    out = multiclass_focal_loss(y_pr, y_gt, alpha=1.0, gamma=2.0,
                                ignore_index=ignore_index)
    out = jax.block_until_ready(out)

    ref = jax.block_until_ready(_reference(y_pr, y_gt, 1.0, 2.0, ignore_index))
    assert jnp.allclose(out, ref, rtol=1e-5, atol=1e-6), (out, ref)

    print("KERNEL_OK")
</pallas_src>

<mosaic_0001>
module attributes {stable_mosaic.version = 11 : i64} {
  func.func @_focal_kernel(%arg0: i32, %arg1: i32, %arg2: memref<1x4x2x128xf32, #tpu.memory_space<vmem>>, %arg3: memref<1x2x128xi32, #tpu.memory_space<vmem>>, %arg4: memref<1x1x1x128xf32, #tpu.memory_space<vmem>>, %arg5: memref<1x1x1x128xf32, #tpu.memory_space<vmem>>) attributes {dimension_semantics = [#tpu.dimension_semantics<parallel>, #tpu.dimension_semantics<parallel>], iteration_bounds = array<i64: 2, 1>, scalar_prefetch = 0 : i64, scratch_operands = 0 : i64, tpu.core_type = #tpu.core_type<tc>, window_params = [{transform_indices = @transform_0, window_bounds = array<i64: 1, 4, 2, 128>}, {transform_indices = @transform_1, window_bounds = array<i64: 1, 2, 128>}, {transform_indices = @transform_2, window_bounds = array<i64: 1, 1, 1, 128>}, {transform_indices = @transform_3, window_bounds = array<i64: 1, 1, 1, 128>}]} {
    %c0 = arith.constant 0 : index
    %c0_0 = arith.constant 0 : index
    %c0_1 = arith.constant 0 : index
    %0 = vector.load %arg3[%c0, %c0_0, %c0_1] : memref<1x2x128xi32, #tpu.memory_space<vmem>>, vector<1x2x128xi32>
    %1 = vector.shape_cast %0 : vector<1x2x128xi32> to vector<2x128xi32>
    %c0_2 = arith.constant 0 : index
    %c0_3 = arith.constant 0 : index
    %c0_4 = arith.constant 0 : index
    %c0_5 = arith.constant 0 : index
    %2 = vector.load %arg2[%c0_2, %c0_3, %c0_4, %c0_5] : memref<1x4x2x128xf32, #tpu.memory_space<vmem>>, vector<1x1x2x128xf32>
    %3 = vector.shape_cast %2 : vector<1x1x2x128xf32> to vector<2x128xf32>
    %c0_6 = arith.constant 0 : index
    %c1 = arith.constant 1 : index
    %c0_7 = arith.constant 0 : index
    %c0_8 = arith.constant 0 : index
    %4 = vector.load %arg2[%c0_6, %c1, %c0_7, %c0_8] : memref<1x4x2x128xf32, #tpu.memory_space<vmem>>, vector<1x1x2x128xf32>
    %5 = vector.shape_cast %4 : vector<1x1x2x128xf32> to vector<2x128xf32>
    %6 = arith.maximumf %3, %5 : vector<2x128xf32>
    %c0_9 = arith.constant 0 : index
    %c2 = arith.constant 2 : index
    %c0_10 = arith.constant 0 : index
    %c0_11 = arith.constant 0 : index
    %7 = vector.load %arg2[%c0_9, %c2, %c0_10, %c0_11] : memref<1x4x2x128xf32, #tpu.memory_space<vmem>>, vector<1x1x2x128xf32>
    %8 = vector.shape_cast %7 : vector<1x1x2x128xf32> to vector<2x128xf32>
    %9 = arith.maximumf %6, %8 : vector<2x128xf32>
    %c0_12 = arith.constant 0 : index
    %c3 = arith.constant 3 : index
    %c0_13 = arith.constant 0 : index
    %c0_14 = arith.constant 0 : index
    %10 = vector.load %arg2[%c0_12, %c3, %c0_13, %c0_14] : memref<1x4x2x128xf32, #tpu.memory_space<vmem>>, vector<1x1x2x128xf32>
    %11 = vector.shape_cast %10 : vector<1x1x2x128xf32> to vector<2x128xf32>
    %12 = arith.maximumf %9, %11 : vector<2x128xf32>
    %cst = arith.constant 0.000000e+00 : f32
    %13 = vector.broadcast %cst : f32 to vector<2x128xf32>
    %cst_15 = arith.constant 0.000000e+00 : f32
    %14 = vector.broadcast %cst_15 : f32 to vector<2x128xf32>
    %cst_16 = arith.constant 0.000000e+00 : f32
    %15 = vector.broadcast %cst_16 : f32 to vector<2x128xf32>
    %c0_17 = arith.constant 0 : index
    %c0_18 = arith.constant 0 : index
    %c0_19 = arith.constant 0 : index
    %c0_20 = arith.constant 0 : index
    %16 = vector.load %arg2[%c0_17, %c0_18, %c0_19, %c0_20] : memref<1x4x2x128xf32, #tpu.memory_space<vmem>>, vector<1x1x2x128xf32>
    %17 = vector.shape_cast %16 : vector<1x1x2x128xf32> to vector<2x128xf32>
    %18 = arith.subf %17, %12 : vector<2x128xf32>
    %19 = math.exp %18 : vector<2x128xf32>
    %20 = arith.addf %13, %19 : vector<2x128xf32>
    %c0_i32 = arith.constant 0 : i32
    %21 = vector.broadcast %c0_i32 : i32 to vector<2x128xi32>
    %22 = arith.cmpi eq, %1, %21 : vector<2x128xi32>
    %23 = arith.select %22, %17, %14 : vector<2x128xi1>, vector<2x128xf32>
    %24 = arith.select %22, %19, %15 : vector<2x128xi1>, vector<2x128xf32>
    %c0_21 = arith.constant 0 : index
    %c1_22 = arith.constant 1 : index
    %c0_23 = arith.constant 0 : index
    %c0_24 = arith.constant 0 : index
    %25 = vector.load %arg2[%c0_21, %c1_22, %c0_23, %c0_24] : memref<1x4x2x128xf32, #tpu.memory_space<vmem>>, vector<1x1x2x128xf32>
    %26 = vector.shape_cast %25 : vector<1x1x2x128xf32> to vector<2x128xf32>
    %27 = arith.subf %26, %12 : vector<2x128xf32>
    %28 = math.exp %27 : vector<2x128xf32>
    %29 = arith.addf %20, %28 : vector<2x128xf32>
    %c1_i32 = arith.constant 1 : i32
    %30 = vector.broadcast %c1_i32 : i32 to vector<2x128xi32>
    %31 = arith.cmpi eq, %1, %30 : vector<2x128xi32>
    %32 = arith.select %31, %26, %23 : vector<2x128xi1>, vector<2x128xf32>
    %33 = arith.select %31, %28, %24 : vector<2x128xi1>, vector<2x128xf32>
    %c0_25 = arith.constant 0 : index
    %c2_26 = arith.constant 2 : index
    %c0_27 = arith.constant 0 : index
    %c0_28 = arith.constant 0 : index
    %34 = vector.load %arg2[%c0_25, %c2_26, %c0_27, %c0_28] : memref<1x4x2x128xf32, #tpu.memory_space<vmem>>, vector<1x1x2x128xf32>
    %35 = vector.shape_cast %34 : vector<1x1x2x128xf32> to vector<2x128xf32>
    %36 = arith.subf %35, %12 : vector<2x128xf32>
    %37 = math.exp %36 : vector<2x128xf32>
    %38 = arith.addf %29, %37 : vector<2x128xf32>
    %c2_i32 = arith.constant 2 : i32
    %39 = vector.broadcast %c2_i32 : i32 to vector<2x128xi32>
    %40 = arith.cmpi eq, %1, %39 : vector<2x128xi32>
    %41 = arith.select %40, %35, %32 : vector<2x128xi1>, vector<2x128xf32>
    %42 = arith.select %40, %37, %33 : vector<2x128xi1>, vector<2x128xf32>
    %c0_29 = arith.constant 0 : index
    %c3_30 = arith.constant 3 : index
    %c0_31 = arith.constant 0 : index
    %c0_32 = arith.constant 0 : index
    %43 = vector.load %arg2[%c0_29, %c3_30, %c0_31, %c0_32] : memref<1x4x2x128xf32, #tpu.memory_space<vmem>>, vector<1x1x2x128xf32>
    %44 = vector.shape_cast %43 : vector<1x1x2x128xf32> to vector<2x128xf32>
    %45 = arith.subf %44, %12 : vector<2x128xf32>
    %46 = math.exp %45 : vector<2x128xf32>
    %47 = arith.addf %38, %46 : vector<2x128xf32>
    %c3_i32 = arith.constant 3 : i32
    %48 = vector.broadcast %c3_i32 : i32 to vector<2x128xi32>
    %49 = arith.cmpi eq, %1, %48 : vector<2x128xi32>
    %50 = arith.select %49, %44, %41 : vector<2x128xi1>, vector<2x128xf32>
    %51 = arith.select %49, %46, %42 : vector<2x128xi1>, vector<2x128xf32>
    %52 = math.log %47 : vector<2x128xf32>
    %53 = arith.subf %50, %12 : vector<2x128xf32>
    %54 = arith.subf %52, %53 : vector<2x128xf32>
    %55 = arith.divf %51, %47 : vector<2x128xf32>
    %c5_i32 = arith.constant 5 : i32
    %56 = vector.broadcast %c5_i32 : i32 to vector<2x128xi32>
    %57 = arith.cmpi ne, %1, %56 : vector<2x128xi32>
    %cst_33 = arith.constant 1.000000e+00 : f32
    %58 = vector.broadcast %cst_33 : f32 to vector<2x128xf32>
    %59 = arith.subf %58, %55 : vector<2x128xf32>
    %cst_34 = arith.constant 0.000000e+00 : f32
    %60 = vector.broadcast %cst_34 : f32 to vector<2x128xf32>
    %61 = arith.maximumf %59, %60 : vector<2x128xf32>
    %62 = arith.mulf %61, %61 : vector<2x128xf32>
    %cst_35 = arith.constant 1.000000e+00 : f32
    %63 = vector.broadcast %cst_35 : f32 to vector<2x128xf32>
    %64 = arith.mulf %63, %62 : vector<2x128xf32>
    %65 = arith.mulf %64, %54 : vector<2x128xf32>
    %cst_36 = arith.constant 0.000000e+00 : f32
    %66 = vector.broadcast %cst_36 : f32 to vector<2x128xf32>
    %67 = arith.select %57, %65, %66 : vector<2x128xi1>, vector<2x128xf32>
    %cst_37 = arith.constant 1.000000e+00 : f32
    %cst_38 = arith.constant 0.000000e+00 : f32
    %68 = vector.broadcast %cst_37 : f32 to vector<2x128xf32>
    %69 = vector.broadcast %cst_38 : f32 to vector<2x128xf32>
    %70 = arith.select %57, %68, %69 : vector<2x128xi1>, vector<2x128xf32>
    %cst_39 = arith.constant dense<0.000000e+00> : vector<128xf32>
    %71 = vector.multi_reduction <add>, %67, %cst_39 [0] : vector<2x128xf32> to vector<128xf32>
    %72 = vector.shape_cast %71 : vector<128xf32> to vector<1x128xf32>
    %c0_40 = arith.constant 0 : index
    %c0_41 = arith.constant 0 : index
    %c0_42 = arith.constant 0 : index
    %c0_43 = arith.constant 0 : index
    %73 = vector.load %arg4[%c0_40, %c0_41, %c0_42, %c0_43] : memref<1x1x1x128xf32, #tpu.memory_space<vmem>>, vector<1x1x1x128xf32>
    %74 = vector.shape_cast %73 : vector<1x1x1x128xf32> to vector<1x128xf32>
    %75 = vector.shape_cast %72 : vector<1x128xf32> to vector<1x1x1x128xf32>
    tpu.vector_store %arg4[%c0_40, %c0_41, %c0_42, %c0_43], %75 {strides = array<i32>} : memref<1x1x1x128xf32, #tpu.memory_space<vmem>>, vector<1x1x1x128xf32>,
    %cst_44 = arith.constant dense<0.000000e+00> : vector<128xf32>
    %76 = vector.multi_reduction <add>, %70, %cst_44 [0] : vector<2x128xf32> to vector<128xf32>
    %77 = vector.shape_cast %76 : vector<128xf32> to vector<1x128xf32>
    %c0_45 = arith.constant 0 : index
    %c0_46 = arith.constant 0 : index
    %c0_47 = arith.constant 0 : index
    %c0_48 = arith.constant 0 : index
    %78 = vector.load %arg5[%c0_45, %c0_46, %c0_47, %c0_48] : memref<1x1x1x128xf32, #tpu.memory_space<vmem>>, vector<1x1x1x128xf32>
    %79 = vector.shape_cast %78 : vector<1x1x1x128xf32> to vector<1x128xf32>
    %80 = vector.shape_cast %77 : vector<1x128xf32> to vector<1x1x1x128xf32>
    tpu.vector_store %arg5[%c0_45, %c0_46, %c0_47, %c0_48], %80 {strides = array<i32>} : memref<1x1x1x128xf32, #tpu.memory_space<vmem>>, vector<1x1x1x128xf32>,
    return
  }
  func.func @transform_0(%arg0: i32, %arg1: i32) -> (i32, i32, i32, i32) {
    %c0_i32 = arith.constant 0 : i32
    %c0_i32_0 = arith.constant 0 : i32
    %c0_i32_1 = arith.constant 0 : i32
    return %arg0, %c0_i32, %arg1, %c0_i32_0 : i32, i32, i32, i32
  }
  func.func @transform_1(%arg0: i32, %arg1: i32) -> (i32, i32, i32) {
    %c0_i32 = arith.constant 0 : i32
    %c0_i32_0 = arith.constant 0 : i32
    return %arg0, %arg1, %c0_i32 : i32, i32, i32
  }
  func.func @transform_2(%arg0: i32, %arg1: i32) -> (i32, i32, i32, i32) {
    %c0_i32 = arith.constant 0 : i32
    %c0_i32_0 = arith.constant 0 : i32
    %c0_i32_1 = arith.constant 0 : i32
    return %arg0, %arg1, %c0_i32, %c0_i32_0 : i32, i32, i32, i32
  }
  func.func @transform_3(%arg0: i32, %arg1: i32) -> (i32, i32, i32, i32) {
    %c0_i32 = arith.constant 0 : i32
    %c0_i32_0 = arith.constant 0 : i32
    %c0_i32_1 = arith.constant 0 : i32
    return %arg0, %arg1, %c0_i32, %c0_i32_0 : i32, i32, i32, i32
  }
}

</mosaic_0001>

<bundles_post_ra>
// kernel: tpu_custom_call.1
= control target key start
LH: loop header
LB: loop body
LE: loop exit
PB: predicated region body
PF: predicated region fallthrough
CT: control target
= control target key end

     0   :  { %9 = vsyncpa [#allocation3], 0  ;;  %s1092_s0 = inlined_call_operand.hbm [shape: f32[2,4,2,128], index: 0, kind: input, shape index: {}]   ;;  %s1093_s1 = inlined_call_operand.hbm [shape: s32[2,2,128], index: 1, kind: input, shape index: {}]   ;;  %s1094_s2 = inlined_call_operand.hbm [shape: f32[2,1,1,128], index: 2, kind: output, shape index: {0}]   ;;  %s1095_s3 = inlined_call_operand.hbm [shape: f32[2,1,1,128], index: 3, kind: output, shape index: {1}]  }
   0x1   :  { %11 = vsyncpa [#allocation3 + $0x1], 0 }
   0x2   :  { %12 = vsyncpa [#allocation6], 0 }
   0x3   :  { %14 = vsyncpa [#allocation6 + $0x1], 0 }
   0x4   :  { %15 = vsyncpa [#allocation4], 0 }
   0x5   :  { %17 = vsyncpa [#allocation4 + $0x1], 0 }
   0x6   :  { %18 = vsyncpa [#allocation9], 0 }
   0x7   :  { %20 = vsyncpa [#allocation9 + $0x1], 0  ;;  %s802_s12 = smov 0   ;;  %s804_s13 = smov 0  }
   0x8   :  { %s806_s14 = smov 0   ;;  %s808_s15 = smov 0  }
   0x9   :  { %s810_s16 = smov 0   ;;  %s812_s17 = smov 0  }
   0xa LB: > { %s488_s18 = sadd.s32 4294967295, %s773_s17   ;;  %s489_s19 = sadd.s32 4294967294, %s773_s17   ;;  %s773_s17 = sphi %s812_s17, %s26_s17   ;;  %s769_s16 = sphi %s810_s16, %s1114_s16   ;;  %s765_s15 = sphi %s808_s15, %s1113_s15   ;;  %s761_s14 = sphi %s806_s14, %s1112_s14   ;;  %s757_s13 = sphi %s804_s13, %s1111_s13   ;;  %s753_s12 = sphi %s802_s12, %s1110_s12  }
   0xb   : > { %s38_s20 = sadd.s32 1, %s769_s16  ;;  %s47_s21 = sadd.s32 1, %s761_s14 }
   0xc   : > { %p40_p0 = scmp.ge.s32.totalorder %s38_s20, 2  ;;  %p54_p1 = scmp.ne.s32.totalorder %s761_s14, %s757_s13 }
   0xd   : > { %p55_p2 = scmp.eq.s32.totalorder %s773_s17, 0  ;;  %p60_p3 = scmp.ne.s32.totalorder %s757_s13, %s753_s12 }
   0xe   : > { %s1116_s20 = smov (%p40_p0, %s38_s20), 0  ;;  %p61_p5 = scmp.eq.s32.totalorder %s488_s18, 0 }
   0xf   : > { %p843_p4 = por %p55_p2, %p54_p1  ;;  %s42_s23 = ssub.s32 %s769_s16, %s1116_s20 }
  0x10   : > { %p114_p6 = scmp.eq.s32.totalorder %s488_s18, 1  ;;  %p45_p7 = scmp.eq.s32.totalorder %s42_s23, 0 }
  0x11   : > { %p849_p8 = por %p61_p5, %p60_p3  ;;  %p120_p10 = scmp.eq.s32.totalorder %s489_s19, 1 }
  0x12   : > { %p853_p9 = por %p114_p6, %p54_p1  ;;  %p530_p13 = scmp.lt.s32.totalorder %s773_s17, 2 }
  0x13   : > { %s1099_s24 = scalar_select %p849_p8, 1, 0 }
  0x14   : > { %s1100_s25 = scalar_select %p853_p9, 1, 0 }
  0x15   : > { %s858_s26 = scalar_select %p45_p7, %s761_s14, %s47_s21  }
  0x16   : > { %p860_p11 = por %p120_p10, %p60_p3  ;;  %s867_s28 = sand.u32 1, %s761_s14  }
  0x17   : > { %s492_s29 = sshll.u32 %s867_s28, 3  ;;  %s507_s30 = sshll.u32 %s769_s16, 7 }
  0x18   : > { %s1101_s27 = scalar_select %p860_p11, 1, 0 }
  0x19   : > { %s874_s6 = scalar_lea.hbm %s1092_s0, %s507_s30  ;;  %s172_s7 = scalar_lea.vmem [#allocation2], %s492_s29 }
  0x1a   : > { %s180_s8 = sshll.u32 %s172_s7, 4  ;;  %p880_p0 = pnand %p530_p13, %p843_p4  ;;  %s876_s8 = int_to_ptr.vmem [resolvable:$true] %s180_s8 }
  0x1b   : > { %s169_s10 = scalar_lea.sflag [#allocation3], %s867_s28  ;;  %s595_s11 = scalar_lea.hbm %s874_s6, 128 }
  0x1c   : > { %p596_p2 = scmp.ne.s32.totalorder %s874_s6, %s595_s11  ;;  %p597_p3 = pneg %p880_p0 }
  0x1d   : > { %s600_s21 = scalar_lea.hbm %s1092_s0, 256  ;;  %p601_p4 = scmp.lt.u32.totalorder %s874_s6, %s1092_s0 }
  0x1e   : > { %p598_p5 = pnand %p597_p3, %p596_p2  ;;  %p602_p7 = scmp.lt.u32.totalorder %s600_s21, %s595_s11 }
  0x1f   : > { %p604_p13 = scmp.lt.u32.totalorder %s595_s11, %s874_s6 }
  0x20   : > { %p599_p6 = pneg %p598_p5  ;;  %p603_p10 = por %p602_p7, %p601_p4 }
  0x22   : > { %p605_p12 = por %p604_p13, %p603_p10 }
  0x24   : > { %p606_p1 = pnand %p605_p12, %p599_p6 }
  0x26   : > { %609 = shalt.err (!%p606_p1)
}
  0x27   : > { %s610_s29 = scalar_lea.vmem %s876_s8, 128  ;;  %s775_s30 = smov [#allocation2]  }
  0x28   : > { %p611_p2 = scmp.ne.s32.totalorder %s876_s8, %s610_s29  ;;  %s615_s4 = sshll.u32 %s775_s30, 4  ;;  %s616_s4 = int_to_ptr.vmem [resolvable:$false] %s615_s4 }
  0x29   : > { %s617_s5 = scalar_lea.vmem %s616_s4, 256  ;;  %p618_p9 = scmp.lt.s32.totalorder %s876_s8, %s616_s4 }
  0x2a   : > { %p613_p5 = pnand %p611_p2, %p597_p3  ;;  %p619_p4 = scmp.lt.s32.totalorder %s617_s5, %s610_s29 }
  0x2c   : > { %p614_p11 = pneg %p613_p5  ;;  %p620_p7 = por %p619_p4, %p618_p9 }
  0x2e   : > { %p621_p10 = pnand %p620_p7, %p614_p11 }
  0x30   : > { %624 = shalt.err (!%p621_p10)
}
  0x31   : > { %s776_s7 = smov 32   ;;  %s777_s11 = smov 2  }
  0x32   : > { %519 = dma.hbm_to_vmem [thread:$0]  (!%p880_p0), %s874_s6, 128, %s876_s8, %s169_s10, %s776_s7, %s776_s7, %s777_s11  }
  0x33   : > { %p207_p12 = scmp.lt.s32.totalorder %s773_s17, 3  ;;  %s495_s18 = sshll.u32 %s867_s28, 1 }
  0x34   : > { %s496_s19 = sshll.u32 %s769_s16, 5  ;;  %p1103_p9 = scmp.ge.s32.totalorder %s773_s17, 1 }
  0x35   : > { %s925_s29 = scalar_lea.hbm %s1093_s1, %s496_s19  ;;  %s194_s30 = scalar_lea.vmem [#allocation5], %s495_s18 }
  0x36   : > { %p918_p11 = pnand %p1103_p9, %p207_p12  ;;  %s202_s4 = sshll.u32 %s194_s30, 4  ;;  %s203_s4 = int_to_ptr.vmem [resolvable:$true] %s202_s4 }
  0x37   : > { %s191_s6 = scalar_lea.sflag [#allocation6], %s867_s28  ;;  %s625_s8 = scalar_lea.hbm %s925_s29, 32 }
  0x38   : > { %s1104_s21 = scalar_select %p918_p11, 1, 0 }
  0x39   : > { %p626_p1 = scmp.ne.s32.totalorder %s925_s29, %s625_s8  ;;  %s630_s7 = scalar_lea.hbm %s1093_s1, 64 }
  0x3a   : > { %p631_p2 = scmp.lt.u32.totalorder %s925_s29, %s1093_s1  ;;  %p632_p5 = scmp.lt.u32.totalorder %s630_s7, %s625_s8 }
  0x3b   : > { %p628_p6 = pnand %p626_p1, %p597_p3  ;;  %p634_p7 = scmp.lt.u32.totalorder %s625_s8, %s925_s29 }
  0x3c   : > { %p633_p4 = por %p632_p5, %p631_p2 }
  0x3d   : > { %p629_p13 = pneg %p628_p6 }
  0x3e   : > { %p635_p10 = por %p634_p7, %p633_p4 }
  0x40   : > { %p636_p12 = pnand %p635_p10, %p629_p13 }
  0x42   : > { %639 = shalt.err (!%p636_p12)
}
  0x43   : > { %s640_s28 = scalar_lea.vmem %s203_s4, 32  ;;  %s778_s18 = smov [#allocation5]  }
  0x44   : > { %p641_p9 = scmp.ne.s32.totalorder %s203_s4, %s640_s28  ;;  %s645_s22 = sshll.u32 %s778_s18, 4  ;;  %s646_s22 = int_to_ptr.vmem [resolvable:$false] %s645_s22 }
  0x45   : > { %s647_s23 = scalar_lea.vmem %s646_s22, 64  ;;  %p648_p8 = scmp.lt.s32.totalorder %s203_s4, %s646_s22 }
  0x46   : > { %p643_p1 = pnand %p641_p9, %p597_p3  ;;  %p649_p11 = scmp.lt.s32.totalorder %s647_s23, %s640_s28 }
  0x48   : > { %p644_p6 = pneg %p643_p1  ;;  %p650_p2 = por %p649_p11, %p648_p8 }
  0x4a   : > { %p651_p5 = pnand %p650_p2, %p644_p6 }
  0x4c   : > { %654 = shalt.err (!%p651_p5)
}
  0x4d   : > { %522 = dma.hbm_to_vmem [thread:$0]  (!%p880_p0), %s925_s29, 32, %s203_s4, %s191_s6  }
  0x4e   : > { %p1105_p13 = scmp.ne.s32.totalorder %s1104_s21, 0 }
  0x4f   : > { %s950_s30 = sand.u32 (!%p1105_p13), 1, %s757_s13   ;;  %p1106_p3 = scmp.ne.s32.totalorder (!%p1105_p13), %s1099_s24, 0 }
  0x50   : > { %211 = sbr.rel (%p1105_p13) target bundleno = 180 (0xb4), region = 28  ;;  %s498_s8 = sshll.u32 (!%p1105_p13), %s950_s30, 3 }
  0x51   : > { %s214_s10 = scalar_lea.sflag (!%p1105_p13), [#allocation3], %s950_s30  ;;  %s217_s5 = scalar_lea.vmem (!%p1105_p13), [#allocation2], %s498_s8 }
  0x57   : > { %736 = dma.done.wait (%p1106_p3), %s214_s10, 128  }
  0x58   : > { %738 = vsyncadd (%p1106_p3), %s214_s10, 4294967168  ;;  %s499_s9 = sshll.u32 %s950_s30, 1  ;;  %s223_s21 = scalar_lea.sflag [#allocation6], %s950_s30 }
  0x59   : > { %s226_s29 = scalar_lea.vmem [#allocation5], %s499_s9 }
  0x5a   : > { %740 = dma.done.wait (%p1106_p3), %s223_s21, 32  }
  0x5b   : > { %742 = vsyncadd (%p1106_p3), %s223_s21, 4294967264  ;;  %v964_v0 = vld [vmem:[%s217_s5] sm:$0x3]  ;;  %v966_v1 = vld [vmem:[%s217_s5 + $0x2] sm:$0x3]  ;;  %vm309_vm0 = vcmask 1041408  }
  0x5c   : > { %v968_v2 = vld [vmem:[%s226_s29] sm:$0x3]  ;;  %v261_v3 = vmax.f32 %v964_v0, %v966_v1  ;;  %v972_v4 = vld [vmem:[%s217_s5 + $0x4] sm:$0x3]  ;;  %v974_v5 = vld [vmem:[%s217_s5 + $0x6] sm:$0x3] }
  0x5d   : > { %vm302_vm1 = vcmp.ne.s32.totalorder %v968_v2, 5  ;;  %v779_v7 = vmov 0.0   ;;  %s256_s24 = scalar_lea.vmem [#allocation8], %s950_s30  ;;  %s503_s6 = sshll.u32 %s765_s15, 4 }
  0x5e   : > { %v264_v6 = vmax.f32 %v261_v3, %v972_v4  ;;  %v308_v8 = vsel %vm302_vm1, 1.0, %v779_v7  ;;  %s358_s4 = sshll.u32 %s256_s24, 4  ;;  %s1001_s19 = scalar_lea.hbm %s1095_s3, %s503_s6  ;;  %s994_s4 = int_to_ptr.vmem [resolvable:$true] %s358_s4 }
  0x5f   : > { %v318_v9 = vsel %vm309_vm0, %v308_v8, 0.0  ;;  %s331_s28 = scalar_lea.sflag [#allocation9], %s950_s30  ;;  %s655_s18 = scalar_lea.vmem %s994_s4, 16 }
  0x60   : > { %v982_v10 = vmax.f32 %v264_v6, %v974_v5  ;;  %v319_v11 = vrot.slane %v318_v9, 4  ;;  %p656_p8 = scmp.ne.s32.totalorder %s994_s4, %s655_s18  ;;  %p1107_p0 = scmp.ne.s32.totalorder %s1100_s25, 0 }
  0x61   : > { %s780_s22 = smov [#allocation8]  }
  0x62   : > { %v268_v12 = vsub.f32 %v964_v0, %v982_v10  ;;  %v275_v13 = vsub.f32 %v966_v1, %v982_v10  ;;  %v282_v14 = vsub.f32 %v972_v4, %v982_v10  ;;  %v289_v15 = vsub.f32 %v974_v5, %v982_v10  ;;  %p657_p11 = pnand %p656_p8, %p1107_p0  ;;  %s659_s23 = sshll.u32 %s780_s22, 4  ;;  %s660_s23 = int_to_ptr.vmem [resolvable:$false] %s659_s23 }
  0x63   : > { %v320_v16 = vadd.f32 %v319_v11, %v318_v9  ;;  %s661_s8 = scalar_lea.vmem %s660_s23, 32  ;;  %p662_p7 = scmp.lt.s32.totalorder %s994_s4, %s660_s23 }
  0x64   : > { %v269_v17 = vmul.f32 1.442695, %v268_v12  ;;  %v276_v18 = vmul.f32 1.442695, %v275_v13  ;;  %v283_v19 = vmul.f32 1.442695, %v282_v14  ;;  %p658_p4 = pneg %p657_p11  ;;  %p663_p10 = scmp.lt.s32.totalorder %s661_s8, %s655_s18 }
  0x65   : > { %v290_v20 = vmul.f32 1.442695, %v289_v15  ;;  %v321_v21 = vrot.slane %v320_v16, 2 }
  0x66   : > { %583 = vpow2.f32 %v269_v17  ;;  %p664_p12 = por %p663_p10, %p662_p7 }
  0x67   : > { %585 = vpow2.f32 %v276_v18  ;;  %v322_v22 = vadd.f32 %v321_v21, %v320_v16 }
  0x68   : > { %587 = vpow2.f32 %v283_v19  ;;  %p665_p9 = pnand %p664_p12, %p658_p4 }
  0x69   : > { %589 = vpow2.f32 %v290_v20  ;;  %v323_v23 = vrot.slane %v322_v22, 1 }
  0x6b   : > { %v324_v24 = vadd.f32 %v323_v23, %v322_v22 }
  0x6d   : > { %325 = vst [vmem:[%s256_s24] sm:$0x1] %v324_v24 }
  0x6e   : > { %668 = shalt.err (!%p665_p9)
}
  0x6f   : > { %s669_s10 = scalar_lea.hbm %s1001_s19, 16  ;;  %s673_s21 = scalar_lea.hbm %s1095_s3, 32 }
  0x70   : > { %p670_p1 = scmp.ne.s32.totalorder %s1001_s19, %s669_s10  ;;  %p674_p5 = scmp.lt.u32.totalorder %s1001_s19, %s1095_s3 }
  0x71   : > { %p675_p13 = scmp.lt.u32.totalorder %s673_s21, %s669_s10  ;;  %p677_p8 = scmp.lt.u32.totalorder %s669_s10, %s1001_s19 }
  0x72   : > { %p671_p6 = pnand %p670_p1, %p1107_p0 }
  0x73   : > { %p676_p3 = por %p675_p13, %p674_p5 }
  0x74   : > { %p672_p2 = pneg %p671_p6 }
  0x75   : > { %p678_p11 = por %p677_p8, %p676_p3 }
  0x77   : > { %p679_p4 = pnand %p678_p11, %p672_p2 }
  0x79   : > { %682 = shalt.err (!%p679_p4)
}
  0x7a   : > { %513 = dma.vmem_to_hbm [thread:$0]  (%p1107_p0), %s994_s4, 16, %s1001_s19, %s331_s28   ;;  %v584_v25 = vpop.eup %583  ;;  %vm272_vm2 = vcmp.eq.s32.totalorder %v968_v2, 0  ;;  %vm279_vm3 = vcmp.eq.s32.totalorder %v968_v2, 1  ;;  %vm286_vm4 = vcmp.eq.s32.totalorder %v968_v2, 2  ;;  %vm293_vm5 = vcmp.eq.s32.totalorder %v968_v2, 3 }
  0x7b   : > { %v586_v26 = vpop.eup %585  ;;  %v273_v32 = vsel %vm272_vm2, %v964_v0, 0.0  ;;  %v274_v33 = vsel %vm272_vm2, %v584_v25, 0.0  ;;  %s250_s4 = scalar_lea.vmem [#allocation7], %s950_s30  ;;  %s1045_s28 = scalar_lea.hbm %s1094_s2, %s503_s6 }
  0x7c   : > { %v588_v27 = vpop.eup %587  ;;  %v278_v28 = vadd.f32 %v586_v26, %v584_v25  ;;  %v280_v34 = vsel %vm279_vm3, %v966_v1, %v273_v32  ;;  %v281_v35 = vsel %vm279_vm3, %v586_v26, %v274_v33  ;;  %s344_s7 = sshll.u32 %s250_s4, 4  ;;  %s327_s18 = scalar_lea.sflag [#allocation4], %s950_s30  ;;  %s1038_s7 = int_to_ptr.vmem [resolvable:$true] %s344_s7 }
  0x7d   : > { %v590_v29 = vpop.eup %589  ;;  %v287_v36 = vsel %vm286_vm4, %v972_v4, %v280_v34  ;;  %v288_v37 = vsel %vm286_vm4, %v588_v27, %v281_v35  ;;  %s683_s22 = scalar_lea.vmem %s1038_s7, 16  ;;  %s781_s23 = smov [#allocation7]  }
  0x7e   : > { %v285_v30 = vadd.f32 %v588_v27, %v278_v28  ;;  %v294_v38 = vsel %vm293_vm5, %v974_v5, %v287_v36  ;;  %v295_v39 = vsel %vm293_vm5, %v590_v29, %v288_v37  ;;  %p684_p7 = scmp.ne.s32.totalorder %s1038_s7, %s683_s22  ;;  %s687_s8 = sshll.u32 %s781_s23, 4  ;;  %s688_s8 = int_to_ptr.vmem [resolvable:$false] %s687_s8 }
  0x7f   : > { %v298_v43 = vsub.f32 %v294_v38, %v982_v10  ;;  %s689_s10 = scalar_lea.vmem %s688_s8, 32  ;;  %p690_p9 = scmp.lt.s32.totalorder %s1038_s7, %s688_s8 }
  0x80   : > { %v292_v31 = vadd.f32 %v590_v29, %v285_v30  ;;  %p685_p10 = pnand %p684_p7, %p1107_p0  ;;  %p691_p1 = scmp.lt.s32.totalorder %s689_s10, %s683_s22 }
  0x82   : > { %591 = vlog2.f32 %v292_v31  ;;  %p686_p12 = pneg %p685_p10  ;;  %p692_p6 = por %p691_p1, %p690_p9 }
  0x83   : > { %593 = vrcp.f32 %v292_v31 }
  0x84   : > { %p693_p2 = pnand %p692_p6, %p686_p12 }
  0x8c   : > { %v592_v40 = vpop.eup %591 }
  0x8d   : > { %v594_v41 = vpop.eup %593  ;;  %v297_v42 = vmul.f32 0.6931472, %v592_v40 }
  0x8e   : > { %v301_v44 = vmul.f32 %v594_v41, %v295_v39 }
  0x8f   : > { %v299_v46 = vsub.f32 %v297_v42, %v298_v43 }
  0x90   : > { %v303_v45 = vsub.f32 1.0, %v301_v44 }
  0x92   : > { %v304_v47 = vmax.f32 %v303_v45, 0.0 }
  0x94   : > { %v305_v48 = vmul.f32 %v304_v47, %v304_v47 }
  0x96   : > { %v306_v49 = vmul.f32 %v305_v48, %v299_v46 }
  0x98   : > { %v307_v50 = vsel %vm302_vm1, %v306_v49, 0.0 }
  0x99   : > { %v310_v51 = vsel %vm309_vm0, %v307_v50, 0.0 }
  0x9a   : > { %v311_v52 = vrot.slane %v310_v51, 4 }
  0x9c   : > { %v312_v53 = vadd.f32 %v311_v52, %v310_v51 }
  0x9e   : > { %v313_v54 = vrot.slane %v312_v53, 2 }
  0xa0   : > { %v314_v55 = vadd.f32 %v313_v54, %v312_v53 }
  0xa2   : > { %v315_v56 = vrot.slane %v314_v55, 1 }
  0xa4   : > { %v316_v57 = vadd.f32 %v315_v56, %v314_v55 }
  0xa6   : > { %317 = vst [vmem:[%s250_s4] sm:$0x1] %v316_v57 }
  0xa7   : > { %696 = shalt.err (!%p693_p2)
}
  0xa8   : > { %s697_s15 = scalar_lea.hbm %s1045_s28, 16  ;;  %s701_s5 = scalar_lea.hbm %s1094_s2, 32 }
  0xa9   : > { %p698_p5 = scmp.ne.s32.totalorder %s1045_s28, %s697_s15  ;;  %p702_p8 = scmp.lt.u32.totalorder %s1045_s28, %s1094_s2 }
  0xaa   : > { %p703_p11 = scmp.lt.u32.totalorder %s701_s5, %s697_s15  ;;  %p705_p7 = scmp.lt.u32.totalorder %s697_s15, %s1045_s28 }
  0xab   : > { %p699_p13 = pnand %p698_p5, %p1107_p0 }
  0xac   : > { %p704_p4 = por %p703_p11, %p702_p8 }
  0xad   : > { %p700_p3 = pneg %p699_p13 }
  0xae   : > { %p706_p10 = por %p705_p7, %p704_p4 }
  0xb0   : > { %p707_p12 = pnand %p706_p10, %p700_p3 }
  0xb2   : > { %710 = shalt.err (!%p707_p12)
}
  0xb3   : > { %512 = dma.vmem_to_hbm [thread:$0]  (%p1107_p0), %s1038_s7, 16, %s1045_s28, %s327_s18  }
  0xb4 PF: > { %s370_s29 = sand.u32 1, %s753_s12   ;;  %p1108_p9 = scmp.ne.s32.totalorder %s1101_s27, 0 }
  0xb5   : > { %p1109_p1 = scmp.ge.s32.totalorder %s773_s17, 2  ;;  %s371_s24 = scalar_lea.sflag [#allocation4], %s370_s29 }
  0xb7   : > { %p524_p6 = pnand %p1109_p1, %p1108_p9 }
  0xb9   : > { %744 = dma.done.wait (!%p524_p6), %s371_s24, 16  }
  0xba   : > { %746 = vsyncadd (!%p524_p6), %s371_s24, 4294967280  ;;  %s379_s4 = scalar_lea.sflag [#allocation9], %s370_s29 }
  0xbb   : > { %748 = dma.done.wait (!%p524_p6), %s379_s4, 16  }
  0xbc   : > { %750 = vsyncadd (!%p524_p6), %s379_s4, 4294967280  ;;  %s26_s17 = sadd.s32 1, %s773_s17   ;;  %s1110_s12 = smov %s757_s13 }
  0xbd   : > { %p23_p2 = scmp.ge.s32.totalorder %s26_s17, 4   ;;  %s1111_s13 = smov %s761_s14 }
  0xbe   : > { %s1112_s14 = smov %s858_s26  ;;  %s1113_s15 = smov %s769_s16 }
  0xbf   : > { %s1114_s16 = smov %s1116_s20  ;;  %25 = sbr.rel (!%p23_p2) target bundleno = 10 (0xa), region = 106 }
  0xc6   :  { %383 = vsyncpa [#allocation3], 1 }
  0xc7   :  { %385 = vsyncpa [#allocation3 + $0x1], 1 }
  0xc8   :  { %386 = vsyncpa [#allocation6], 1 }
  0xc9   :  { %388 = vsyncpa [#allocation6 + $0x1], 1 }
  0xca   :  { %389 = vsyncpa [#allocation4], 1 }
  0xcb   :  { %391 = vsyncpa [#allocation4 + $0x1], 1 }
  0xcc   :  { %392 = vsyncpa [#allocation9], 1 }
  0xcd   :  { %394 = vsyncpa [#allocation9 + $0x1], 1 }

</bundles_post_ra>
